<compile_context>
chip_gen: v6e
topology: v6e:2x2x1
jax: 0.10.0
libtpu: 0.0.40
codegen_flags: <defaults>
</compile_context>

<pallas_src>
import functools
import math

import jax
import jax.numpy as jnp
from jax import lax
from jax.experimental import pallas as pl
from jax.experimental.pallas import tpu as pltpu

PAD = 0  # padding symbol, as in seq2seq.tools.config
_MIB = 1 << 20


# ---------------------------------------------------------------------------
# Hardware-aware knobs
# ---------------------------------------------------------------------------
def _vmem_capacity_bytes():
    try:
        return int(pltpu.get_tpu_info().vmem_capacity_bytes)
    except Exception:
        return 128 * _MIB  # conservative default (v5e/v6e)


_VMEM_CAP = _vmem_capacity_bytes()
_VMEM_SAFE = (3 * _VMEM_CAP) // 4            # ~48 MiB on v7x, ~96 MiB on v5e/v6e
_TQ_CAP = 256 if _VMEM_CAP >= 96 * _MIB else 128   # bigger query tiles on 128-MiB parts
_TK_CAP = 256                                 # bounds the (H, TQ, TK) score live set


def _buffered_single_supported():
    """Probe whether BlockSpec(pipeline_mode=pl.Buffered(1)) lowers on this jax/TPU."""
    try:
        def k(x_ref, o_ref):
            o_ref[...] = x_ref[...] + 1.0
        out = pl.pallas_call(
            k,
            grid=(1,),
            in_specs=[pl.BlockSpec((8, 128), lambda i: (0, 0),
                                   pipeline_mode=pl.Buffered(1))],
            out_specs=pl.BlockSpec((8, 128), lambda i: (0, 0)),
            out_shape=jax.ShapeDtypeStruct((8, 128), jnp.float32),
        )(jnp.zeros((8, 128), jnp.float32))
        jax.block_until_ready(out)
        return True
    except Exception:
        return False


_SINGLE_BUF_OK = _buffered_single_supported()


def _pick_tile(s, cap, align):
    """Largest tile <= cap dividing s with tile % align == 0; full row for short s."""
    if s <= cap:
        return s
    for t in range(min(cap, s), 0, -1):
        if s % t == 0 and t % align == 0:
            return t
    return s  # degenerate (e.g. prime s > cap): full-row tile, functionally correct


def _const_index_map(n_grid, nd):
    if n_grid == 2:
        return lambda b, i: (0,) * nd
    return lambda b, i, j: (0,) * nd


def _weight_spec(shape, n_grid):
    """BlockSpec for a grid-invariant operand; single-buffered when supported."""
    idx = _const_index_map(n_grid, len(shape))
    if _SINGLE_BUF_OK:
        return pl.BlockSpec(shape, idx, pipeline_mode=pl.Buffered(1))
    return pl.BlockSpec(shape, idx)


# ---------------------------------------------------------------------------
# Kernel 1: fused bf16 Q|K|V projection (once per token)
# ---------------------------------------------------------------------------
def qkv_proj_kernel(x_ref, wqkv_ref, bqkv_ref, qkv_ref):
    x = x_ref[0]                                             # (TS, D) bf16
    y = jnp.dot(x, wqkv_ref[...], preferred_element_type=jnp.float32)
    qkv_ref[0] = (y + bqkv_ref[...]).astype(jnp.bfloat16)    # (TS, 3D) bf16


def qkv_projection(x_bf16, wqkv, bqkv):
    B, S, D = x_bf16.shape
    D3 = wqkv.shape[1]
    ts = _pick_tile(S, _TQ_CAP, 8)
    grid = (B, S // ts)

    wbuf = 1 if _SINGLE_BUF_OK else 2
    need = (wqkv.size * 2 + bqkv.size * 4) * wbuf \
        + 2 * (ts * D * 2 + ts * D3 * 2) + 8 * _MIB
    vmem_limit = int(max(16 * _MIB, min(_VMEM_SAFE, max(32 * _MIB, need))))

    return pl.pallas_call(
        qkv_proj_kernel,
        grid=grid,
        in_specs=[
            pl.BlockSpec((1, ts, D), lambda b, i: (b, i, 0)),
            _weight_spec((D, D3), 2),
            _weight_spec((1, D3), 2),
        ],
        out_specs=pl.BlockSpec((1, ts, D3), lambda b, i: (b, i, 0)),
        out_shape=jax.ShapeDtypeStruct((B, S, D3), jnp.bfloat16),
        compiler_params=pltpu.CompilerParams(
            dimension_semantics=("parallel", "parallel"),
            vmem_limit_bytes=vmem_limit),
    )(x_bf16, wqkv, bqkv)


# ---------------------------------------------------------------------------
# Kernel 2: flash-style attention (online softmax over KV tiles) + FFN epilogue
# ---------------------------------------------------------------------------
def _layernorm(x, g, b, eps=1e-5):
    mu = jnp.mean(x, axis=-1, keepdims=True)
    xc = x - mu
    var = jnp.mean(xc * xc, axis=-1, keepdims=True)
    return xc * lax.rsqrt(var + eps) * g + b


def attn_ffn_kernel(xq_ref, q_ref, k_ref, v_ref, mask_ref,
                    wo_ref, bo_ref, g1_ref, beta1_ref,
                    w1_ref, b1_ref, w2_ref, b2_ref, g2_ref, beta2_ref,
                    o_ref,
                    m_sc, l_sc, acc_sc, ctx_ref, *, num_heads):
    ki = pl.program_id(2)

    @pl.when(ki == 0)
    def _init():
        m_sc[...] = jnp.full(m_sc.shape, -jnp.inf, jnp.float32)
        l_sc[...] = jnp.zeros(l_sc.shape, jnp.float32)
        acc_sc[...] = jnp.zeros(acc_sc.shape, jnp.float32)

    q = q_ref[0]            # (H, TQ, dh) bf16 (1/sqrt(dh) already folded into Q)
    k = k_ref[0]            # (H, TK, dh) bf16
    v = v_ref[0]            # (H, TK, dh) bf16

    # batched-over-heads QK^T on the MXU, f32 accumulation
    s = jnp.einsum('hqd,hkd->hqk', q, k, preferred_element_type=jnp.float32)
    s = s + mask_ref[...]   # (1,1,TK) additive key mask (0 / -1e9), broadcast

    # online softmax, f32 statistics (no bf16 EUP on v5e)
    m_prev = m_sc[...]
    m_new = jnp.maximum(m_prev, jnp.max(s, axis=-1, keepdims=True))   # (H, TQ, 1)
    alpha = jnp.exp(m_prev - m_new)
    p = jnp.exp(s - m_new)
    l_sc[...] = alpha * l_sc[...] + jnp.sum(p, axis=-1, keepdims=True)
    acc_sc[...] = alpha * acc_sc[...] + jnp.einsum(
        'hqk,hkd->hqd', p.astype(jnp.bfloat16), v,
        preferred_element_type=jnp.float32)
    m_sc[...] = m_new

    @pl.when(ki == pl.num_programs(2) - 1)
    def _epilogue():
        D = ctx_ref.shape[1]
        dh = D // num_heads
        # approx reciprocal uses the EUP slot; ~2^-12 relative error vs exact divide
        inv_l = pl.reciprocal(l_sc[...], approx=True)                  # (H, TQ, 1)
        ctx = acc_sc[...] * inv_l                                      # (H, TQ, dh) f32
        # concatenate heads into a bf16 VMEM scratch (H partial-lane stores, once
        # per query tile only) so the Wo matmul is a single K=D bf16 contraction.
        for h in range(num_heads):                                     # static, H small
            ctx_ref[:, h * dh:(h + 1) * dh] = ctx[h].astype(jnp.bfloat16)

        attn = jnp.dot(ctx_ref[...], wo_ref[...],
                       preferred_element_type=jnp.float32) + bo_ref[...]

        xq = xq_ref[0]                                                 # (TQ, D) f32
        x1 = _layernorm(attn + xq, g1_ref[...], beta1_ref[...])

        h1 = jnp.dot(x1.astype(jnp.bfloat16), w1_ref[...],
                     preferred_element_type=jnp.float32) + b1_ref[...]
        h1 = jnp.maximum(h1, 0.0)
        h2 = jnp.dot(h1.astype(jnp.bfloat16), w2_ref[...],
                     preferred_element_type=jnp.float32) + b2_ref[...]

        o_ref[0] = _layernorm(h2 + x1, g2_ref[...], beta2_ref[...])


def encoder_block(x, add_mask, lp, num_heads):
    """One EncoderBlock applied to x: (B, S, D) f32 -> (B, S, D) f32."""
    B, S, D = x.shape
    H = num_heads
    dh = D // H
    inner = lp["w1"].shape[1]
    assert D % H == 0

    # 1) fused bf16 Q|K|V projection, once per token
    x_bf16 = x.astype(jnp.bfloat16)                       # matmul operand only
    qkv = qkv_projection(x_bf16, lp["wqkv"], lp["bqkv"])  # (B, S, 3D) bf16
    q, k, v = jnp.split(qkv, 3, axis=-1)

    def split_heads(t):                                   # layout plumbing (plain XLA)
        return t.reshape(B, S, H, dh).transpose(0, 2, 1, 3)   # (B, H, S, dh) bf16

    q, k, v = split_heads(q), split_heads(k), split_heads(v)

    # 2) attention + FFN
    tq = _pick_tile(S, _TQ_CAP, 8)
    tk = _pick_tile(S, _TK_CAP, 128)
    n_qt, n_kt = S // tq, S // tk
    grid = (B, n_qt, n_kt)

    wbuf = 1 if _SINGLE_BUF_OK else 2
    weight_bytes = ((D * D + D * inner + inner * D) * 2          # bf16 matrices
                    + (6 * D + inner) * 4) * wbuf                # f32 biases / LN params
    act_bytes = 2 * (tq * D * 4 + tq * D * 2 + 2 * tk * D * 2 + tk * 4 + tq * D * 4)
    scratch_bytes = 2 * H * tq * 128 * 4 + tq * D * 4 + tq * D * 2
    inter_bytes = 3 * H * tq * tk * 4                            # score / exp live set
    need = weight_bytes + act_bytes + scratch_bytes + inter_bytes + 8 * _MIB
    vmem_limit = int(max(16 * _MIB, min(_VMEM_SAFE, max(32 * _MIB, need))))

    def ws(shape):
        return _weight_spec(shape, 3)

    in_specs = [
        pl.BlockSpec((1, tq, D), lambda b, qi, ki: (b, qi, 0)),         # residual x tile
        pl.BlockSpec((1, H, tq, dh), lambda b, qi, ki: (b, 0, qi, 0)),  # Q
        pl.BlockSpec((1, H, tk, dh), lambda b, qi, ki: (b, 0, ki, 0)),  # K
        pl.BlockSpec((1, H, tk, dh), lambda b, qi, ki: (b, 0, ki, 0)),  # V
        pl.BlockSpec((1, 1, tk), lambda b, qi, ki: (b, 0, ki)),         # additive key mask
        ws((D, D)), ws((1, D)),                                         # wo, bo
        ws((1, D)), ws((1, D)),                                         # ln1 gamma, beta
        ws((D, inner)), ws((1, inner)),                                 # w1, b1
        ws((inner, D)), ws((1, D)),                                     # w2, b2
        ws((1, D)), ws((1, D)),                                         # ln2 gamma, beta
    ]

    kernel = functools.partial(attn_ffn_kernel, num_heads=H)
    return pl.pallas_call(
        kernel,
        grid=grid,
        in_specs=in_specs,
        out_specs=pl.BlockSpec((1, tq, D), lambda b, qi, ki: (b, qi, 0)),
        out_shape=jax.ShapeDtypeStruct((B, S, D), jnp.float32),
        scratch_shapes=[
            pltpu.VMEM((H, tq, 1), jnp.float32),    # running max
            pltpu.VMEM((H, tq, 1), jnp.float32),    # running sum
            pltpu.VMEM((H, tq, dh), jnp.float32),   # PV accumulator
            pltpu.VMEM((tq, D), jnp.bfloat16),      # concatenated head context (bf16)
        ],
        compiler_params=pltpu.CompilerParams(
            dimension_semantics=("parallel", "parallel", "arbitrary"),
            vmem_limit_bytes=vmem_limit),
    )(x, q, k, v, add_mask,
      lp["wo"], lp["bo"], lp["g1"], lp["beta1"],
      lp["w1"], lp["b1"], lp["w2"], lp["b2"], lp["g2"], lp["beta2"])


# ---------------------------------------------------------------------------
# Plain-JAX glue: embedding, positional embedding, mask, parameter init/prep
# ---------------------------------------------------------------------------
def positional_embedding(length, channels, min_timescale=1.0, max_timescale=1.0e4):
    # Matches seq2seq's positional_embedding: cat([sin, cos], channel axis).
    num_timescales = channels // 2
    log_inc = math.log(float(max_timescale) / float(min_timescale)) / (num_timescales - 1)
    position = jnp.arange(length, dtype=jnp.float32)
    inv_timescales = min_timescale * jnp.exp(
        jnp.arange(num_timescales, dtype=jnp.float32) * -log_inc)
    scaled_time = position[:, None] * inv_timescales[None, :]
    pe = jnp.concatenate([jnp.sin(scaled_time), jnp.cos(scaled_time)], axis=1)
    return pe[None]  # (1, length, channels)


def init_params(key, vocab, D, inner, num_layers):
    keys = jax.random.split(key, 1 + num_layers)
    emb = 0.02 * jax.random.normal(keys[0], (vocab, D), jnp.float32)
    emb = emb.at[PAD].set(0.0)  # nn.Embedding(padding_idx=PAD)
    layers = []
    for l in range(num_layers):
        ks = jax.random.split(keys[1 + l], 6)

        def lin(k, fan_in, fan_out):
            return (1.0 / math.sqrt(fan_in)) * jax.random.normal(
                k, (fan_in, fan_out), jnp.float32)

        layers.append(dict(
            wq=lin(ks[0], D, D), bq=jnp.zeros((1, D), jnp.float32),
            wk=lin(ks[1], D, D), bk=jnp.zeros((1, D), jnp.float32),
            wv=lin(ks[2], D, D), bv=jnp.zeros((1, D), jnp.float32),
            wo=lin(ks[3], D, D), bo=jnp.zeros((1, D), jnp.float32),
            g1=jnp.ones((1, D), jnp.float32), beta1=jnp.zeros((1, D), jnp.float32),
            w1=lin(ks[4], D, inner), b1=jnp.zeros((1, inner), jnp.float32),
            w2=lin(ks[5], inner, D), b2=jnp.zeros((1, D), jnp.float32),
            g2=jnp.ones((1, D), jnp.float32), beta2=jnp.zeros((1, D), jnp.float32),
        ))
    return emb, layers


def prepare_layer_params(p, num_heads):
    """Hoist the bf16 weight casts + Q/K/V fusion out of the forward pass.

    The 1/sqrt(dh) attention scale is folded into the Q columns of the fused
    weight/bias so the kernel does not rescale scores.
    """
    D = p["wq"].shape[0]
    dh = D // num_heads
    scale = 1.0 / math.sqrt(dh)
    wqkv = jnp.concatenate([p["wq"] * scale, p["wk"], p["wv"]],
                           axis=1).astype(jnp.bfloat16)                 # (D, 3D) bf16
    bqkv = jnp.concatenate([p["bq"] * scale, p["bk"], p["bv"]], axis=1)  # (1, 3D) f32
    return dict(
        wqkv=wqkv, bqkv=bqkv,
        wo=p["wo"].astype(jnp.bfloat16), bo=p["bo"],
        g1=p["g1"], beta1=p["beta1"],
        w1=p["w1"].astype(jnp.bfloat16), b1=p["b1"],
        w2=p["w2"].astype(jnp.bfloat16), b2=p["b2"],
        g2=p["g2"], beta2=p["beta2"])


def transformer_attention_encoder(inputs, emb, prepared_layers, num_heads):
    """Forward pass. Returns (outputs, padding_mask) ~ State(outputs, mask, batch_first=True)."""
    B, S = inputs.shape
    D = emb.shape[1]
    padding_mask = (inputs == PAD)                                       # inputs.eq(PAD)
    add_mask = jnp.where(padding_mask, -1e9, 0.0).astype(jnp.float32)[:, None, :]  # (B,1,S)
    x = emb[inputs] * (D ** 0.5)                                         # embed * sqrt(hidden)
    x = x + positional_embedding(S, D)
    # dropout(p=0) == identity
    for lp in prepared_layers:
        x = encoder_block(x, add_mask, lp, num_heads)
    return x, padding_mask


# ---------------------------------------------------------------------------
if __name__ == "__main__":
    VOCAB, HIDDEN, INNER = 50, 64, 128
    NUM_LAYERS, NUM_HEADS = 2, 4
    B, S = 2, 16

    key = jax.random.PRNGKey(0)
    k_param, k_in = jax.random.split(key)

    emb, layers = init_params(k_param, VOCAB, HIDDEN, INNER, NUM_LAYERS)
    prepared = [prepare_layer_params(p, NUM_HEADS) for p in layers]

    inputs = jax.random.randint(k_in, (B, S), 1, VOCAB, dtype=jnp.int32)
    inputs = inputs.at[0, -3:].set(PAD)   # exercise the padding mask

    outputs, mask = transformer_attention_encoder(inputs, emb, prepared, NUM_HEADS)
    jax.block_until_ready(outputs)

    assert outputs.shape == (B, S, HIDDEN) and outputs.dtype == jnp.float32
    assert mask.shape == (B, S)
    assert bool(jnp.all(jnp.isfinite(outputs)))
    print("KERNEL_OK")
</pallas_src>

<mosaic_0001>
module attributes {stable_mosaic.version = 11 : i64} {
  func.func @k(%arg0: i32, %arg1: memref<8x128xf32, #tpu.memory_space<vmem>>, %arg2: memref<8x128xf32, #tpu.memory_space<vmem>>) attributes {dimension_semantics = [#tpu.dimension_semantics<arbitrary>], iteration_bounds = array<i64: 1>, scalar_prefetch = 0 : i64, scratch_operands = 0 : i64, tpu.core_type = #tpu.core_type<tc>, window_params = [{pipeline_mode = #tpu.pipeline_mode<synchronous>, transform_indices = @transform_0, window_bounds = array<i64: 8, 128>}, {pipeline_mode = #tpu.pipeline_mode<synchronous>, transform_indices = @transform_1, window_bounds = array<i64: 8, 128>}]} {
    %c0 = arith.constant 0 : index
    %c0_0 = arith.constant 0 : index
    %0 = vector.load %arg1[%c0, %c0_0] : memref<8x128xf32, #tpu.memory_space<vmem>>, vector<8x128xf32>
    %cst = arith.constant 1.000000e+00 : f32
    %1 = vector.broadcast %cst : f32 to vector<8x128xf32>
    %2 = arith.addf %0, %1 : vector<8x128xf32>
    %c0_1 = arith.constant 0 : index
    %c0_2 = arith.constant 0 : index
    %3 = vector.load %arg2[%c0_1, %c0_2] : memref<8x128xf32, #tpu.memory_space<vmem>>, vector<8x128xf32>
    tpu.vector_store %arg2[%c0_1, %c0_2], %2 {strides = array<i32>} : memref<8x128xf32, #tpu.memory_space<vmem>>, vector<8x128xf32>,
    return
  }
  func.func @transform_0(%arg0: i32) -> (i32, i32) {
    %c0_i32 = arith.constant 0 : i32
    %c0_i32_0 = arith.constant 0 : i32
    %c0_i32_1 = arith.constant 0 : i32
    return %c0_i32, %c0_i32_0 : i32, i32
  }
  func.func @transform_1(%arg0: i32) -> (i32, i32) {
    %c0_i32 = arith.constant 0 : i32
    %c0_i32_0 = arith.constant 0 : i32
    %c0_i32_1 = arith.constant 0 : i32
    return %c0_i32, %c0_i32_0 : i32, i32
  }
}

module attributes {stable_mosaic.version = 11 : i64} {
  func.func @qkv_proj_kernel(%arg0: i32, %arg1: i32, %arg2: memref<1x16x64xbf16, #tpu.memory_space<vmem>>, %arg3: memref<64x192xbf16, #tpu.memory_space<vmem>>, %arg4: memref<1x192xf32, #tpu.memory_space<vmem>>, %arg5: memref<1x16x192xbf16, #tpu.memory_space<vmem>>) attributes {dimension_semantics = [#tpu.dimension_semantics<parallel>, #tpu.dimension_semantics<parallel>], iteration_bounds = array<i64: 2, 1>, scalar_prefetch = 0 : i64, scratch_operands = 0 : i64, tpu.core_type = #tpu.core_type<tc>, window_params = [{transform_indices = @transform_0, window_bounds = array<i64: 1, 16, 64>}, {pipeline_mode = #tpu.pipeline_mode<synchronous>, transform_indices = @transform_1, window_bounds = array<i64: 64, 192>}, {pipeline_mode = #tpu.pipeline_mode<synchronous>, transform_indices = @transform_2, window_bounds = array<i64: 1, 192>}, {transform_indices = @transform_3, window_bounds = array<i64: 1, 16, 192>}]} {
    %c0 = arith.constant 0 : index
    %c0_0 = arith.constant 0 : index
    %c0_1 = arith.constant 0 : index
    %0 = vector.load %arg2[%c0, %c0_0, %c0_1] : memref<1x16x64xbf16, #tpu.memory_space<vmem>>, vector<1x16x64xbf16>
    %1 = vector.shape_cast %0 : vector<1x16x64xbf16> to vector<16x64xbf16>
    %c0_2 = arith.constant 0 : index
    %c0_3 = arith.constant 0 : index
    %2 = vector.load %arg3[%c0_2, %c0_3] : memref<64x192xbf16, #tpu.memory_space<vmem>>, vector<64x192xbf16>
    %cst = arith.constant dense<0.000000e+00> : vector<16x192xf32>
    %3 = tpu.matmul %1, %2, %cst {dimension_numbers = #tpu.dot_dimension_numbers<[1], [0], [0], [1], [0, 0, 1, 1], [], []>} : vector<16x64xbf16>, vector<64x192xbf16>, vector<16x192xf32> -> vector<16x192xf32>
    %c0_4 = arith.constant 0 : index
    %c0_5 = arith.constant 0 : index
    %4 = vector.load %arg4[%c0_4, %c0_5] : memref<1x192xf32, #tpu.memory_space<vmem>>, vector<1x192xf32>
    %5 = vector.broadcast %4 : vector<1x192xf32> to vector<16x192xf32>
    %6 = arith.addf %3, %5 : vector<16x192xf32>
    %7 = arith.truncf %6 : vector<16x192xf32> to vector<16x192xbf16>
    %c0_6 = arith.constant 0 : index
    %c0_7 = arith.constant 0 : index
    %c0_8 = arith.constant 0 : index
    %8 = vector.load %arg5[%c0_6, %c0_7, %c0_8] : memref<1x16x192xbf16, #tpu.memory_space<vmem>>, vector<1x16x192xbf16>
    %9 = vector.shape_cast %8 : vector<1x16x192xbf16> to vector<16x192xbf16>
    %10 = vector.shape_cast %7 : vector<16x192xbf16> to vector<1x16x192xbf16>
    tpu.vector_store %arg5[%c0_6, %c0_7, %c0_8], %10 {strides = array<i32>} : memref<1x16x192xbf16, #tpu.memory_space<vmem>>, vector<1x16x192xbf16>,
    return
  }
  func.func @transform_0(%arg0: i32, %arg1: i32) -> (i32, i32, i32) {
    %c0_i32 = arith.constant 0 : i32
    %c0_i32_0 = arith.constant 0 : i32
    return %arg0, %arg1, %c0_i32 : i32, i32, i32
  }
  func.func @transform_1(%arg0: i32, %arg1: i32) -> (i32, i32) {
    %c0_i32 = arith.constant 0 : i32
    %c0_i32_0 = arith.constant 0 : i32
    %c0_i32_1 = arith.constant 0 : i32
    return %c0_i32, %c0_i32_0 : i32, i32
  }
  func.func @transform_2(%arg0: i32, %arg1: i32) -> (i32, i32) {
    %c0_i32 = arith.constant 0 : i32
    %c0_i32_0 = arith.constant 0 : i32
    %c0_i32_1 = arith.constant 0 : i32
    return %c0_i32, %c0_i32_0 : i32, i32
  }
  func.func @transform_3(%arg0: i32, %arg1: i32) -> (i32, i32, i32) {
    %c0_i32 = arith.constant 0 : i32
    %c0_i32_0 = arith.constant 0 : i32
    return %arg0, %arg1, %c0_i32 : i32, i32, i32
  }
}

</mosaic_0001>

<bundles_post_ra>
// kernel: tpu_custom_call.1
= control target key start
LH: loop header
LB: loop body
LE: loop exit
PB: predicated region body
PF: predicated region fallthrough
CT: control target
= control target key end

     0   :  { %6 = vsyncpa [#allocation3], 0  ;;  %s103_s0 = inlined_call_operand.hbm [shape: f32[8,128], index: 0, kind: input, shape index: {}]   ;;  %s104_s1 = inlined_call_operand.hbm [shape: f32[8,128], index: 1, kind: output, shape index: {}]  }
   0x1   :  { %7 = vsyncpa [#allocation4], 0  ;;  %s85_s6 = smov [#allocation2]  }
   0x2   :  { %s14_s7 = sshll.u32 %s85_s6, 4  ;;  %s15_s7 = int_to_ptr.vmem [resolvable:$true] %s14_s7 }
   0x3   :  { %s49_s8 = scalar_lea.vmem %s15_s7, 128  ;;  %p54_p1 = scmp.lt.s32.totalorder %s15_s7, %s15_s7 }
   0x4   :  { %p50_p0 = scmp.ne.s32.totalorder %s15_s7, %s49_s8  ;;  %p55_p2 = scmp.lt.s32.totalorder %s49_s8, %s49_s8 }
   0x6   :  { %p56_p3 = por %p55_p2, %p54_p1 }
   0x8   :  { %p57_p4 = pnand %p56_p3, %p50_p0 }
   0xa   :  { %60 = shalt.err (!%p57_p4)
}
   0xb   :  { %17 = dma.hbm_to_vmem [thread:$0]  %s103_s0, 128, %s15_s7, [#allocation3]  }
   0xc   :  { %81 = dma.done.wait [#allocation3], 128  }
   0xd   :  { %82 = vsyncadd [#allocation3], 4294967168  ;;  %s86_s11 = smov [#allocation5]   ;;  %v21_v0 = vld [vmem:[#allocation2] sm:$0xff] }
   0xe   :  { %s30_s12 = sshll.u32 %s86_s11, 4  ;;  %v22_v1 = vadd.f32 1.0, %v21_v0  ;;  %s31_s12 = int_to_ptr.vmem [resolvable:$true] %s30_s12 }
   0xf   :  { %s61_s13 = scalar_lea.vmem %s31_s12, 128  ;;  %p66_p6 = scmp.lt.s32.totalorder %s31_s12, %s31_s12 }
  0x10   :  { %23 = vst [vmem:[#allocation5] sm:$0xff] %v22_v1  ;;  %p62_p5 = scmp.ne.s32.totalorder %s31_s12, %s61_s13  ;;  %p67_p7 = scmp.lt.s32.totalorder %s61_s13, %s61_s13 }
  0x12   :  { %p68_p8 = por %p67_p7, %p66_p6 }
  0x14   :  { %p69_p9 = pnand %p68_p8, %p62_p5 }
  0x16   :  { %72 = shalt.err (!%p69_p9)
}
  0x17   :  { %33 = dma.vmem_to_hbm [thread:$0]  %s31_s12, 128, %s104_s1, [#allocation4]  }
  0x18   :  { %83 = dma.done.wait [#allocation4], 128  }
  0x19   :  { %84 = vsyncadd [#allocation4], 4294967168 }
  0x1a   :  { %37 = vsyncpa [#allocation3], 1 }
  0x1b   :  { %38 = vsyncpa [#allocation4], 1 }

// kernel: tpu_custom_call.1
= control target key start
LH: loop header
LB: loop body
LE: loop exit
PB: predicated region body
PF: predicated region fallthrough
CT: control target
= control target key end

     0   :  { %8 = vsyncpa [#allocation3], 0  ;;  %s951_s0 = inlined_call_operand.hbm [shape: bf16[2,16,64], index: 0, kind: input, shape index: {}]   ;;  %s952_s1 = inlined_call_operand.hbm [shape: bf16[64,192], index: 1, kind: input, shape index: {}]   ;;  %s953_s2 = inlined_call_operand.vmem [shape: f32[1,192], index: 2, kind: input, shape index: {}]   ;;  %s954_s3 = inlined_call_operand.hbm [shape: bf16[2,16,192], index: 3, kind: output, shape index: {}]  }
   0x1   :  { %10 = vsyncpa [#allocation3 + $0x1], 0 }
   0x2   :  { %11 = vsyncpa [#allocation6], 0 }
   0x3   :  { %12 = vsyncpa [#allocation4], 0 }
   0x4   :  { %14 = vsyncpa [#allocation4 + $0x1], 0  ;;  %s766_s12 = smov 0   ;;  %s768_s13 = smov 0  }
   0x5   :  { %s770_s14 = smov 0   ;;  %s772_s15 = smov 0  }
   0x6   :  { %s774_s16 = smov 0   ;;  %s776_s17 = smov 0  }
   0x7 LB: > { %s470_s18 = sadd.s32 4294967295, %s734_s17   ;;  %s471_s19 = sadd.s32 4294967294, %s734_s17   ;;  %s734_s17 = sphi %s776_s17, %s20_s17   ;;  %s730_s16 = sphi %s774_s16, %s972_s16   ;;  %s726_s15 = sphi %s772_s15, %s971_s15   ;;  %s722_s14 = sphi %s770_s14, %s970_s14   ;;  %s718_s13 = sphi %s768_s13, %s969_s13   ;;  %s714_s12 = sphi %s766_s12, %s968_s12  }
   0x8   : > { %p54_p0 = scmp.ne.s32.totalorder %s718_s13, %s714_s12  ;;  %p800_p1 = scmp.eq.s32.totalorder %s470_s18, 0 }
   0x9   : > { %p804_p2 = scmp.eq.s32.totalorder %s470_s18, 1  ;;  %p128_p3 = scmp.eq.s32.totalorder %s471_s19, 1 }
   0xa   : > { %p810_p4 = por %p800_p1, %p54_p0  ;;  %p472_p5 = scmp.ge.s32.totalorder %s734_s17, 1 }
   0xb   : > { %p815_p6 = por %p128_p3, %p54_p0  ;;  %p135_p7 = scmp.lt.s32.totalorder %s734_s17, 3 }
   0xc   : > { %s958_s22 = scalar_select %p810_p4, 1, 0 }
   0xd   : > { %s959_s23 = scalar_select %p815_p6, 1, 0 }
   0xe   : > { %p820_p8 = pnand %p472_p5, %p135_p7  ;;  %s736_s25 = smov [#allocation5]  }
   0xf   : > { %s147_s26 = sshll.u32 %s736_s25, 4  ;;  %s32_s28 = sadd.s32 1, %s730_s16  ;;  %s148_s26 = int_to_ptr.vmem [resolvable:$true] %s147_s26 }
  0x10   : > { %p511_p9 = pneg %p820_p8  ;;  %s607_s29 = scalar_lea.vmem %s148_s26, 1024 }
  0x11   : > { %p608_p13 = scmp.ne.s32.totalorder %s148_s26, %s607_s29  ;;  %p615_p5 = scmp.lt.s32.totalorder %s148_s26, %s148_s26 }
  0x12   : > { %p829_p11 = pnand %p511_p9, %p800_p1  ;;  %p616_p7 = scmp.lt.s32.totalorder %s607_s29, %s607_s29 }
  0x14   : > { %p598_p12 = pneg %p829_p11  ;;  %p617_p6 = por %p616_p7, %p615_p5 }
  0x16   : > { %p610_p0 = pnand %p608_p13, %p598_p12 }
  0x18   : > { %p611_p3 = pneg %p610_p0 }
  0x1a   : > { %p618_p4 = pnand %p617_p6, %p611_p3 }
  0x1c   : > { %621 = shalt.err (!%p618_p4)
}
  0x1d   : > { %s737_s30 = smov 128   ;;  %s738_s4 = smov 8  }
  0x1e   : > { %514 = dma.hbm_to_vmem [thread:$0]  (!%p829_p11), %s952_s1, 1024, %s148_s26, [#allocation6], %s737_s30, %s737_s30, %s738_s4  }
  0x1f   : > { %p34_p6 = scmp.ge.s32.totalorder %s32_s28, 2  ;;  %s41_s7 = sadd.s32 1, %s722_s14 }
  0x20   : > { %p48_p4 = scmp.ne.s32.totalorder %s722_s14, %s718_s13  ;;  %p49_p9 = scmp.eq.s32.totalorder %s734_s17, 0 }
  0x21   : > { %s974_s28 = smov (%p34_p6, %s32_s28), 0  ;;  %p524_p0 = scmp.lt.s32.totalorder %s734_s17, 2 }
  0x22   : > { %p847_p12 = por %p49_p9, %p48_p4  ;;  %p853_p13 = por %p804_p2, %p48_p4 }
  0x23   : > { %s36_s10 = ssub.s32 %s730_s16, %s974_s28  ;;  %s164_s11 = sand.u32 1, %s722_s14  }
  0x24   : > { %p39_p11 = scmp.eq.s32.totalorder %s36_s10, 0  ;;  %s475_s18 = sshll.u32 %s164_s11, 3 }
  0x25   : > { %s499_s25 = sshll.u32 %s730_s16, 7  ;;  %s168_s30 = scalar_lea.vmem [#allocation2], %s475_s18 }
  0x26   : > { %s862_s19 = scalar_select %p39_p11, %s722_s14, %s41_s7  }
  0x27   : > { %s176_s29 = scalar_lea.hbm %s951_s0, %s499_s25  ;;  %s177_s4 = sshll.u32 %s168_s30, 4  ;;  %s178_s4 = int_to_ptr.vmem [resolvable:$true] %s177_s4 }
  0x28   : > { %p870_p2 = pnand %p524_p0, %p847_p12  ;;  %s165_s5 = scalar_lea.sflag [#allocation3], %s164_s11 }
  0x29   : > { %s635_s6 = scalar_lea.vmem %s178_s4, 128  ;;  %s739_s7 = smov [#allocation2]  }
  0x2a   : > { %p624_p3 = pneg %p870_p2  ;;  %p636_p5 = scmp.ne.s32.totalorder %s178_s4, %s635_s6 }
  0x2b   : > { %s640_s10 = sshll.u32 %s739_s7, 4  ;;  %s641_s10 = int_to_ptr.vmem [resolvable:$false] %s640_s10 }
  0x2c   : > { %p638_p7 = pnand %p636_p5, %p624_p3  ;;  %s642_s25 = scalar_lea.vmem %s641_s10, 256 }
  0x2d   : > { %p643_p4 = scmp.lt.s32.totalorder %s178_s4, %s641_s10  ;;  %p644_p9 = scmp.lt.s32.totalorder %s642_s25, %s635_s6 }
  0x2e   : > { %p639_p6 = pneg %p638_p7 }
  0x2f   : > { %p645_p11 = por %p644_p9, %p643_p4 }
  0x31   : > { %p646_p10 = pnand %p645_p11, %p639_p6 }
  0x33   : > { %649 = shalt.err (!%p646_p10)
}
  0x34   : > { %s740_s8 = smov 64   ;;  %s741_s18 = smov 4  }
  0x35   : > { %518 = dma.hbm_to_vmem [thread:$0]  (!%p870_p2), %s176_s29, 128, %s178_s4, %s165_s5, %s740_s8, %s740_s8, %s741_s18  }
  0x36   : > { %189 = sbr.rel (%p820_p8) target bundleno = 296 (0x128), region = 32  ;;  %s881_s11 = sand.u32 (!%p820_p8), 1, %s718_s13  }
  0x37   : > { %s479_s26 = sshll.u32 (!%p820_p8), %s881_s11, 3  ;;  %s192_s27 = scalar_lea.sflag (!%p820_p8), [#allocation3], %s881_s11 }
  0x38   : > { %s195_s30 = scalar_lea.vmem (!%p820_p8), [#allocation2], %s479_s26  ;;  %p965_p12 = scmp.ne.s32.totalorder (!%p820_p8), %s958_s22, 0 }
  0x3b   : > { %701 = dma.done.wait (%p965_p12), %s192_s27, 128  }
  0x3c   : > { %703 = vsyncadd (%p965_p12), %s192_s27, 4294967168 }
  0x3d   : > { %705 = dma.done.wait (%p800_p1), [#allocation6], 1024  }
  0x3e   : > { %707 = vsyncadd (%p800_p1), [#allocation6], 4294966272  ;;  %v742_v0 = vmov 0   ;;  %v583_v1 = vld [vmem:[#allocation5 + $0x34] ss:$8 sps:$4 sm:$0xff]   ;;  %vm292_vm0 = vcmask 523264   ;;  %v237_v10 = vlaneseq }
  0x3f   : > { %328 = vmatprep.mubr.bf16.mxu0 %v742_v0  ;;  %v585_v2 = vld [vmem:[#allocation5 + $0x30] ss:$8 sps:$4 sm:$0xff]   ;;  %304 = vmatprep.subr.bf16.mxu0 %v583_v1  ;;  %v586_v3 = vld [vmem:[#allocation5 + $0x24] ss:$8 sps:$4 sm:$0xff]   ;;  %v588_v4 = vld [vmem:[#allocation5 + $0x20] ss:$8 sps:$4 sm:$0xff]  }
  0x40   : > { %305 = vmatpush1.bf16.msra.mxu0 %v585_v2  ;;  %v589_v5 = vld [vmem:[#allocation5 + $0x14] ss:$8 sps:$4 sm:$0xff]   ;;  %v591_v6 = vld [vmem:[#allocation5 + $0x10] ss:$8 sps:$4 sm:$0xff]   ;;  %v592_v7 = vld [vmem:[#allocation5 + $0x4] ss:$8 sps:$4 sm:$0xff]  }
  0x41   : > { %306 = vmatprep.subr.bf16.mxu0 %v586_v3  ;;  %v594_v8 = vld [vmem:[#allocation5] ss:$8 sps:$4 sm:$0xff]   ;;  %v595_v9 = vld [vmem:[%s195_s30] sm:$0xff]   ;;  %v238_v11 = vshrl.u32 %v237_v10, 7  ;;  %s481_s24 = sshll.u32 %s881_s11, 4  ;;  %vm351_vm1 = vcmask 1043456  }
  0x42   : > { %v235_v14 = vld [vmem:[%s953_s2] sm:$0x3]  ;;  %vm352_vm2 = vcmask 523268   ;;  %s502_s29 = sshll.u32 %s726_s15, 8  ;;  %s221_s4 = scalar_lea.vmem [#allocation7], %s481_s24 }
  0x43   : > { %v239_v12 = vsub.s32 0, %v238_v11  ;;  %v243_v13 = vsub.s32 1, %v238_v11  ;;  %vm353_vm3 = vmor %vm352_vm2, %vm351_vm1  ;;  %s373_s21 = sshll.u32 %s221_s4, 4  ;;  %s901_s7 = scalar_lea.hbm %s954_s3, %s502_s29  ;;  %s903_s21 = int_to_ptr.vmem [resolvable:$true] %s373_s21 }
  0x44   : > { %307 = vmatpush1.bf16.msra.mxu0 %v588_v4  ;;  %s357_s10 = scalar_lea.sflag [#allocation4], %s881_s11  ;;  %s650_s15 = scalar_lea.vmem %s903_s21, 256 }
  0x45   : > { %308 = vmatprep.subr.bf16.mxu0 %v589_v5  ;;  %v240_v15 = vrot.slane %v235_v14, %v239_v12  ;;  %v244_v16 = vrot.slane %v235_v14, %v243_v13  ;;  %p651_p1 = scmp.ne.s32.totalorder %s903_s21, %s650_s15  ;;  %s743_s25 = smov [#allocation7]  }
  0x46   : > { %s654_s8 = sshll.u32 %s743_s25, 4  ;;  %s655_s8 = int_to_ptr.vmem [resolvable:$false] %s654_s8 }
  0x47   : > { %p652_p8 = pnand %p651_p1, %p853_p13  ;;  %s656_s18 = scalar_lea.vmem %s655_s8, 512 }
  0x48   : > { %309 = vmatpush1.bf16.msra.mxu0 %v591_v6  ;;  %p657_p0 = scmp.lt.s32.totalorder %s903_s21, %s655_s8  ;;  %p658_p2 = scmp.lt.s32.totalorder %s656_s18, %s650_s15 }
  0x49   : > { %310 = vmatprep.subr.bf16.mxu0 %v592_v7  ;;  %p653_p10 = pneg %p652_p8 }
  0x4a   : > { %p659_p3 = por %p658_p2, %p657_p0 }
  0x4c   : > { %311 = vmatpush1.bf16.msra.mxu0 %v594_v8  ;;  %p660_p5 = pnand %p659_p3, %p653_p10 }
  0x4f   : > { %491 = vmatmul.mubr.msk.bf16.vlgmr.msra.gmra.mxu0 %vm292_vm0, %v595_v9 }
 0x10f   : > { %v330_v17 = vpop.f32.mrf.mxu0 }
 0x110   : > { %v331_v19 = vadd.f32 %v330_v17, %v240_v15 }
 0x111   : > { %v332_v18 = vpop.f32.mrf.mxu0 }
 0x112   : > { %v333_v20 = vadd.f32 %v332_v18, %v244_v16 }
 0x113   : > { %v334_v21 = vpop.f32.mrf.mxu0 }
 0x114   : > { %v500_v22 = vpack.c.bf16 %v333_v20, %v331_v19  ;;  %v335_v24 = vadd.f32 %v334_v21, %v240_v15 }
 0x115   : > { %v336_v23 = vpop.f32.mrf.mxu0 }
 0x116   : > { %354 = vst.msk [vmem:[%s221_s4] sm:$0xff] %vm353_vm3, %v500_v22  ;;  %v337_v25 = vadd.f32 %v336_v23, %v244_v16 }
 0x118   : > { %v501_v26 = vpack.c.bf16 %v337_v25, %v335_v24 }
 0x11a   : > { %355 = vst.msk [vmem:[%s221_s4 + $0x8] sm:$0xff] %vm353_vm3, %v501_v26 }
 0x11b   : > { %663 = shalt.err (!%p660_p5)
}
 0x11c   : > { %s664_s26 = scalar_lea.hbm %s901_s7, 256  ;;  %s668_s20 = scalar_lea.hbm %s954_s3, 512 }
 0x11d   : > { %p665_p7 = scmp.ne.s32.totalorder %s901_s7, %s664_s26  ;;  %p669_p9 = scmp.lt.s32.totalorder %s901_s7, %s954_s3 }
 0x11e   : > { %p670_p11 = scmp.lt.s32.totalorder %s668_s20, %s664_s26 }
 0x11f   : > { %p666_p6 = pnand %p665_p7, %p853_p13 }
 0x120   : > { %p671_p12 = por %p670_p11, %p669_p9 }
 0x121   : > { %p667_p4 = pneg %p666_p6 }
 0x123   : > { %p672_p1 = pnand %p671_p12, %p667_p4 }
 0x125   : > { %675 = shalt.err (!%p672_p1)
}
 0x126   : > { %s744_s29 = smov 128   ;;  %s745_s4 = smov 8  }
 0x127   : > { %509 = dma.vmem_to_hbm [thread:$0]  (%p853_p13), %s903_s21, 256, %s901_s7, %s357_s10, %s744_s29, %s744_s29, %s745_s4  }
 0x128 PF: > { %s388_s5 = sand.u32 1, %s714_s12   ;;  %p966_p8 = scmp.ne.s32.totalorder %s959_s23, 0 }
 0x129   : > { %p967_p10 = scmp.ge.s32.totalorder %s734_s17, 2  ;;  %s389_s6 = scalar_lea.sflag [#allocation4], %s388_s5 }
 0x12b   : > { %p520_p0 = pnand %p967_p10, %p966_p8 }
 0x12d   : > { %p521_p2 = pneg %p520_p0 }
 0x12f   : > { %709 = dma.done.wait (%p521_p2), %s389_s6, 256  }
 0x130   : > { %711 = vsyncadd (%p521_p2), %s389_s6, 4294967040  ;;  %s20_s17 = sadd.s32 1, %s734_s17   ;;  %s968_s12 = smov %s718_s13 }
 0x131   : > { %p17_p3 = scmp.ge.s32.totalorder %s20_s17, 4   ;;  %s969_s13 = smov %s722_s14 }
 0x132   : > { %s970_s14 = smov %s862_s19  ;;  %s971_s15 = smov %s730_s16 }
 0x133   : > { %s972_s16 = smov %s974_s28  ;;  %19 = sbr.rel (!%p17_p3) target bundleno = 7 (0x7), region = 81 }
 0x138   :  { %394 = vsyncpa [#allocation3], 1 }
 0x139   :  { %396 = vsyncpa [#allocation3 + $0x1], 1 }
 0x13a   :  { %397 = vsyncpa [#allocation6], 1 }
 0x13b   :  { %398 = vsyncpa [#allocation4], 1 }
 0x13c   :  { %400 = vsyncpa [#allocation4 + $0x1], 1 }

</bundles_post_ra>
